<compile_context>
chip_gen: v7x
topology: tpu7x:2x2x1
jax: 0.10.0
libtpu: 0.0.40
codegen_flags: <defaults>
</compile_context>

<pallas_src>
import functools

import jax
import jax.numpy as jnp
from jax import lax
from jax.experimental import pallas as pl
from jax.experimental.pallas import tpu as pltpu

EPS = 1e-5


def bottleneck_kernel(x_ref, w1_ref, s1_ref, b1_ref,
                      w2_ref, s2_ref, b2_ref,
                      w3_ref, s3_ref, b3_ref,
                      o_ref, *, H, W):
    """One image per grid step.

    x_ref : (1, Cin, H*W)     w1_ref: (P, Cin)      w2_ref: (3, 3, Pout, Pin)
    o_ref : (1, Cout, H*W)    w3_ref: (Cout, P)     s*/b* : (C, 1) folded BN
    """
    HW = H * W
    cdt = x_ref.dtype          # MXU operand dtype (bf16-ready); accum is f32

    # ---- conv1 (1x1) + bn1 + relu ---------------------------------------
    # (P, Cin) @ (Cin, HW) -> (P, HW); lane axis = HW.
    h1 = jnp.dot(w1_ref[...], x_ref[0], preferred_element_type=jnp.float32)
    h1 = jnp.maximum(h1 * s1_ref[...] + b1_ref[...], 0.0).astype(cdt)

    # ---- conv2 (3x3, stride 1, pad 1) + bn2 + relu ------------------------
    # One flat zero-pad of (W + 1) on each side; tap (dy, dx) is the static
    # slice starting at (W + 1) + dy*W + dx.  The row wrap-around of the +-1
    # column shifts is removed with a per-dx lane mask (computed once).
    P = w2_ref.shape[2]
    zpad = jnp.zeros((P, W + 1), cdt)
    h1p = jnp.concatenate([zpad, h1, zpad], axis=1)        # (P, HW + 2W + 2)

    col = lax.broadcasted_iota(jnp.int32, (1, HW), 1) % W
    col_masks = {-1: col >= 1, 0: None, 1: col <= W - 2}

    acc = jnp.zeros((P, HW), jnp.float32)
    for ky in range(3):
        for kx in range(3):
            s = (ky - 1) * W + (kx - 1)
            src = h1p[:, W + 1 + s: W + 1 + s + HW]        # (P, HW)
            mask = col_masks[kx - 1]
            if mask is not None:
                src = jnp.where(mask, src, 0).astype(cdt)
            acc = acc + jnp.dot(w2_ref[ky, kx], src,
                                preferred_element_type=jnp.float32)
    h2 = jnp.maximum(acc * s2_ref[...] + b2_ref[...], 0.0).astype(cdt)

    # ---- conv3 (1x1) + bn3 ------------------------------------------------
    h3 = jnp.dot(w3_ref[...], h2, preferred_element_type=jnp.float32)
    h3 = h3 * s3_ref[...] + b3_ref[...]

    # ---- residual add (re-read x_ref; no long-lived copy) + relu ----------
    out = jnp.maximum(h3 + x_ref[0].astype(jnp.float32), 0.0)
    o_ref[0] = out.astype(o_ref.dtype)


def fold_bn(gamma, beta, mean, var):
    scale = gamma / jnp.sqrt(var + EPS)
    bias = beta - mean * scale
    return (scale.reshape(-1, 1).astype(jnp.float32),
            bias.reshape(-1, 1).astype(jnp.float32))


@jax.jit
def bottleneck_forward(x_nchw, w1, w2, w3, bn1, bn2, bn3):
    """x_nchw: (N, Cin, H, W); w1: (Cin, P); w2: (3,3,Pin,Pout) HWIO; w3: (P, Cout)."""
    N, Cin, H, W = x_nchw.shape
    P = w1.shape[1]
    Cout = w3.shape[1]
    HW = H * W
    cdt = x_nchw.dtype

    s1, b1 = fold_bn(*bn1)
    s2, b2 = fold_bn(*bn2)
    s3, b3 = fold_bn(*bn3)

    # Weights in (out, in) matmul layout to match the (C, H*W) activations.
    w1t = w1.T.astype(cdt)                                  # (P, Cin)
    w2t = jnp.transpose(w2, (0, 1, 3, 2)).astype(cdt)       # (3, 3, Pout, Pin)
    w3t = w3.T.astype(cdt)                                  # (Cout, P)

    x_flat = x_nchw.reshape(N, Cin, HW)

    itemsize = jnp.dtype(cdt).itemsize
    flops = 2 * N * HW * (Cin * P + 9 * P * P + P * Cout)
    bytes_accessed = ((x_flat.size + N * Cout * HW) * itemsize
                      + (w1t.size + w2t.size + w3t.size) * itemsize
                      + 4 * (4 * P + 2 * Cout))

    full = lambda shape: pl.BlockSpec(shape, lambda n: (0,) * len(shape))
    out_flat = pl.pallas_call(
        functools.partial(bottleneck_kernel, H=H, W=W),
        out_shape=jax.ShapeDtypeStruct((N, Cout, HW), cdt),
        grid_spec=pltpu.PrefetchScalarGridSpec(
            num_scalar_prefetch=0,
            grid=(N,),
            in_specs=[
                pl.BlockSpec((1, Cin, HW), lambda n: (n, 0, 0)),
                full((P, Cin)), full((P, 1)), full((P, 1)),
                full((3, 3, P, P)), full((P, 1)), full((P, 1)),
                full((Cout, P)), full((Cout, 1)), full((Cout, 1)),
            ],
            out_specs=pl.BlockSpec((1, Cout, HW), lambda n: (n, 0, 0)),
        ),
        compiler_params=pltpu.CompilerParams(
            dimension_semantics=("parallel",),
            vmem_limit_bytes=48 * 1024 * 1024),
        cost_estimate=pl.CostEstimate(
            flops=flops, transcendentals=0,
            bytes_accessed=int(bytes_accessed)),
    )(x_flat, w1t, s1, b1, w2t, s2, b2, w3t, s3, b3)

    return out_flat.reshape(N, Cout, H, W)


def reference_forward(x_nchw, w1, w2, w3, bn1, bn2, bn3):
    """Pure-JAX NCHW reference (mirrors the PyTorch module in eval mode)."""
    def conv(x, w_hwio, padding):
        return lax.conv_general_dilated(
            x, w_hwio, window_strides=(1, 1), padding=padding,
            dimension_numbers=("NCHW", "HWIO", "NCHW"))

    def bn(x, p):
        g, b, m, v = (t.reshape(1, -1, 1, 1) for t in p)
        return (x - m) / jnp.sqrt(v + EPS) * g + b

    h = jax.nn.relu(bn(conv(x_nchw, w1.reshape(1, 1, *w1.shape), "VALID"), bn1))
    h = jax.nn.relu(bn(conv(h, w2, "SAME"), bn2))
    h = bn(conv(h, w3.reshape(1, 1, *w3.shape), "VALID"), bn3)
    return jax.nn.relu(h + x_nchw)


if __name__ == "__main__":
    key = jax.random.PRNGKey(0)
    N, H, W = 2, 16, 16
    planes = 4
    inplanes = planes * 4          # residual add requires inplanes == planes*4
    Cout = planes * 4

    ks = jax.random.split(key, 16)
    x_nchw = jax.random.normal(ks[0], (N, inplanes, H, W), jnp.float32)

    # conv weights stored in matmul/HWIO-friendly layouts
    w1 = 0.2 * jax.random.normal(ks[1], (inplanes, planes), jnp.float32)
    w2 = 0.2 * jax.random.normal(ks[2], (3, 3, planes, planes), jnp.float32)
    w3 = 0.2 * jax.random.normal(ks[3], (planes, Cout), jnp.float32)

    def bn_params(kg, kb, km, kv, c):
        gamma = 1.0 + 0.1 * jax.random.normal(kg, (c,), jnp.float32)
        beta = 0.1 * jax.random.normal(kb, (c,), jnp.float32)
        mean = 0.1 * jax.random.normal(km, (c,), jnp.float32)
        var = jnp.abs(jax.random.normal(kv, (c,), jnp.float32)) + 0.5
        return (gamma, beta, mean, var)

    bn1 = bn_params(ks[4], ks[5], ks[6], ks[7], planes)
    bn2 = bn_params(ks[8], ks[9], ks[10], ks[11], planes)
    bn3 = bn_params(ks[12], ks[13], ks[14], ks[15], Cout)

    out = bottleneck_forward(x_nchw, w1, w2, w3, bn1, bn2, bn3)
    out = jax.block_until_ready(out)

    ref = reference_forward(x_nchw, w1, w2, w3, bn1, bn2, bn3)
    assert out.shape == (N, Cout, H, W)
    assert jnp.allclose(out, ref, atol=1e-4, rtol=1e-4), (
        float(jnp.max(jnp.abs(out - ref))))

    print("KERNEL_OK")
</pallas_src>

<mosaic_0001>
module attributes {stable_mosaic.version = 11 : i64} {
  func.func @bottleneck_kernel(%arg0: i32, %arg1: memref<1x16x256xf32, #tpu.memory_space<vmem>>, %arg2: memref<4x16xf32, #tpu.memory_space<vmem>>, %arg3: memref<4x1xf32, #tpu.memory_space<vmem>>, %arg4: memref<4x1xf32, #tpu.memory_space<vmem>>, %arg5: memref<3x3x4x4xf32, #tpu.memory_space<vmem>>, %arg6: memref<4x1xf32, #tpu.memory_space<vmem>>, %arg7: memref<4x1xf32, #tpu.memory_space<vmem>>, %arg8: memref<16x4xf32, #tpu.memory_space<vmem>>, %arg9: memref<16x1xf32, #tpu.memory_space<vmem>>, %arg10: memref<16x1xf32, #tpu.memory_space<vmem>>, %arg11: memref<1x16x256xf32, #tpu.memory_space<vmem>>) attributes {dimension_semantics = [#tpu.dimension_semantics<parallel>], iteration_bounds = array<i64: 2>, scalar_prefetch = 0 : i64, scratch_operands = 0 : i64, tpu.core_type = #tpu.core_type<tc>, window_params = [{transform_indices = @transform_0, window_bounds = array<i64: 1, 16, 256>}, {pipeline_mode = #tpu.pipeline_mode<synchronous>, transform_indices = @transform_1, window_bounds = array<i64: 4, 16>}, {pipeline_mode = #tpu.pipeline_mode<synchronous>, transform_indices = @transform_2, window_bounds = array<i64: 4, 1>}, {pipeline_mode = #tpu.pipeline_mode<synchronous>, transform_indices = @transform_3, window_bounds = array<i64: 4, 1>}, {pipeline_mode = #tpu.pipeline_mode<synchronous>, transform_indices = @transform_4, window_bounds = array<i64: 3, 3, 4, 4>}, {pipeline_mode = #tpu.pipeline_mode<synchronous>, transform_indices = @transform_5, window_bounds = array<i64: 4, 1>}, {pipeline_mode = #tpu.pipeline_mode<synchronous>, transform_indices = @transform_6, window_bounds = array<i64: 4, 1>}, {pipeline_mode = #tpu.pipeline_mode<synchronous>, transform_indices = @transform_7, window_bounds = array<i64: 16, 4>}, {pipeline_mode = #tpu.pipeline_mode<synchronous>, transform_indices = @transform_8, window_bounds = array<i64: 16, 1>}, {pipeline_mode = #tpu.pipeline_mode<synchronous>, transform_indices = @transform_9, window_bounds = array<i64: 16, 1>}, {transform_indices = @transform_10, window_bounds = array<i64: 1, 16, 256>}]} {
    %c0 = arith.constant 0 : index
    %c0_0 = arith.constant 0 : index
    %0 = vector.load %arg2[%c0, %c0_0] : memref<4x16xf32, #tpu.memory_space<vmem>>, vector<4x16xf32>
    %c0_1 = arith.constant 0 : index
    %c0_2 = arith.constant 0 : index
    %c0_3 = arith.constant 0 : index
    %1 = vector.load %arg1[%c0_1, %c0_2, %c0_3] : memref<1x16x256xf32, #tpu.memory_space<vmem>>, vector<1x16x256xf32>
    %2 = vector.shape_cast %1 : vector<1x16x256xf32> to vector<16x256xf32>
    %cst = arith.constant dense<0.000000e+00> : vector<4x256xf32>
    %3 = tpu.matmul %0, %2, %cst {dimension_numbers = #tpu.dot_dimension_numbers<[1], [0], [0], [1], [0, 0, 1, 1], [], []>} : vector<4x16xf32>, vector<16x256xf32>, vector<4x256xf32> -> vector<4x256xf32>
    %c0_4 = arith.constant 0 : index
    %c0_5 = arith.constant 0 : index
    %4 = vector.load %arg3[%c0_4, %c0_5] : memref<4x1xf32, #tpu.memory_space<vmem>>, vector<4x1xf32>
    %5 = vector.broadcast %4 : vector<4x1xf32> to vector<4x256xf32>
    %6 = arith.mulf %3, %5 : vector<4x256xf32>
    %c0_6 = arith.constant 0 : index
    %c0_7 = arith.constant 0 : index
    %7 = vector.load %arg4[%c0_6, %c0_7] : memref<4x1xf32, #tpu.memory_space<vmem>>, vector<4x1xf32>
    %8 = vector.broadcast %7 : vector<4x1xf32> to vector<4x256xf32>
    %9 = arith.addf %6, %8 : vector<4x256xf32>
    %cst_8 = arith.constant 0.000000e+00 : f32
    %10 = vector.broadcast %cst_8 : f32 to vector<4x256xf32>
    %11 = arith.maximumf %9, %10 : vector<4x256xf32>
    %cst_9 = arith.constant 0.000000e+00 : f32
    %12 = vector.broadcast %cst_9 : f32 to vector<4x17xf32>
    %13 = tpu.concatenate %12, %11, %12 in 1 : vector<4x17xf32>, vector<4x256xf32>, vector<4x17xf32> -> vector<4x290xf32>
    %14 = tpu.iota {dimensions = array<i32: 1>} : vector<1x256xi32>
    %c16_i32 = arith.constant 16 : i32
    %c0_i32 = arith.constant 0 : i32
    %15 = arith.cmpi eq, %c16_i32, %c0_i32 : i32
    %c1_i32 = arith.constant 1 : i32
    %16 = arith.select %15, %c1_i32, %c16_i32 : i32
    %17 = vector.broadcast %16 : i32 to vector<1x256xi32>
    %18 = arith.remsi %14, %17 : vector<1x256xi32>
    %c0_i32_10 = arith.constant 0 : i32
    %19 = vector.broadcast %c0_i32_10 : i32 to vector<1x256xi32>
    %20 = arith.cmpi ne, %18, %19 : vector<1x256xi32>
    %c0_i32_11 = arith.constant 0 : i32
    %21 = vector.broadcast %c0_i32_11 : i32 to vector<1x256xi32>
    %22 = arith.cmpi slt, %18, %21 : vector<1x256xi32>
    %c0_i32_12 = arith.constant 0 : i32
    %23 = arith.cmpi slt, %16, %c0_i32_12 : i32
    %24 = vector.broadcast %23 : i1 to vector<1x256xi1>
    %25 = vector.broadcast %24 : vector<1x256xi1> to vector<1x256xi1>
    %26 = arith.xori %22, %25 : vector<1x256xi1>
    %27 = arith.andi %26, %20 : vector<1x256xi1>
    %28 = vector.broadcast %16 : i32 to vector<1x256xi32>
    %29 = arith.addi %18, %28 : vector<1x256xi32>
    %30 = arith.select %27, %29, %18 : vector<1x256xi1>, vector<1x256xi32>
    %c1_i32_13 = arith.constant 1 : i32
    %31 = vector.broadcast %c1_i32_13 : i32 to vector<1x256xi32>
    %32 = arith.cmpi sge, %30, %31 : vector<1x256xi32>
    %c14_i32 = arith.constant 14 : i32
    %33 = vector.broadcast %c14_i32 : i32 to vector<1x256xi32>
    %34 = arith.cmpi sle, %30, %33 : vector<1x256xi32>
    %cst_14 = arith.constant 0.000000e+00 : f32
    %35 = vector.broadcast %cst_14 : f32 to vector<4x256xf32>
    %36 = vector.extract_strided_slice %13 {offsets = [0, 0], sizes = [4, 256], strides = [1, 1]} : vector<4x290xf32> to vector<4x256xf32>
    %c0_i32_15 = arith.constant 0 : i32
    %37 = arith.sitofp %c0_i32_15 : i32 to f32
    %38 = vector.shape_cast %32 : vector<1x256xi1> to vector<1x256xi1>
    %39 = vector.broadcast %38 : vector<1x256xi1> to vector<4x256xi1>
    %40 = vector.broadcast %37 : f32 to vector<4x256xf32>
    %41 = arith.select %39, %36, %40 : vector<4x256xi1>, vector<4x256xf32>
    %c0_16 = arith.constant 0 : index
    %c0_17 = arith.constant 0 : index
    %c0_18 = arith.constant 0 : index
    %c0_19 = arith.constant 0 : index
    %42 = vector.load %arg5[%c0_16, %c0_17, %c0_18, %c0_19] : memref<3x3x4x4xf32, #tpu.memory_space<vmem>>, vector<1x1x4x4xf32>
    %43 = vector.shape_cast %42 : vector<1x1x4x4xf32> to vector<4x4xf32>
    %cst_20 = arith.constant dense<0.000000e+00> : vector<4x256xf32>
    %44 = tpu.matmul %43, %41, %cst_20 {dimension_numbers = #tpu.dot_dimension_numbers<[1], [0], [0], [1], [0, 0, 1, 1], [], []>} : vector<4x4xf32>, vector<4x256xf32>, vector<4x256xf32> -> vector<4x256xf32>
    %45 = arith.addf %35, %44 : vector<4x256xf32>
    %46 = vector.extract_strided_slice %13 {offsets = [0, 1], sizes = [4, 256], strides = [1, 1]} : vector<4x290xf32> to vector<4x256xf32>
    %c0_21 = arith.constant 0 : index
    %c1 = arith.constant 1 : index
    %c0_22 = arith.constant 0 : index
    %c0_23 = arith.constant 0 : index
    %47 = vector.load %arg5[%c0_21, %c1, %c0_22, %c0_23] : memref<3x3x4x4xf32, #tpu.memory_space<vmem>>, vector<1x1x4x4xf32>
    %48 = vector.shape_cast %47 : vector<1x1x4x4xf32> to vector<4x4xf32>
    %cst_24 = arith.constant dense<0.000000e+00> : vector<4x256xf32>
    %49 = tpu.matmul %48, %46, %cst_24 {dimension_numbers = #tpu.dot_dimension_numbers<[1], [0], [0], [1], [0, 0, 1, 1], [], []>} : vector<4x4xf32>, vector<4x256xf32>, vector<4x256xf32> -> vector<4x256xf32>
    %50 = arith.addf %45, %49 : vector<4x256xf32>
    %51 = vector.extract_strided_slice %13 {offsets = [0, 2], sizes = [4, 256], strides = [1, 1]} : vector<4x290xf32> to vector<4x256xf32>
    %c0_i32_25 = arith.constant 0 : i32
    %52 = arith.sitofp %c0_i32_25 : i32 to f32
    %53 = vector.shape_cast %34 : vector<1x256xi1> to vector<1x256xi1>
    %54 = vector.broadcast %53 : vector<1x256xi1> to vector<4x256xi1>
    %55 = vector.broadcast %52 : f32 to vector<4x256xf32>
    %56 = arith.select %54, %51, %55 : vector<4x256xi1>, vector<4x256xf32>
    %c0_26 = arith.constant 0 : index
    %c2 = arith.constant 2 : index
    %c0_27 = arith.constant 0 : index
    %c0_28 = arith.constant 0 : index
    %57 = vector.load %arg5[%c0_26, %c2, %c0_27, %c0_28] : memref<3x3x4x4xf32, #tpu.memory_space<vmem>>, vector<1x1x4x4xf32>
    %58 = vector.shape_cast %57 : vector<1x1x4x4xf32> to vector<4x4xf32>
    %cst_29 = arith.constant dense<0.000000e+00> : vector<4x256xf32>
    %59 = tpu.matmul %58, %56, %cst_29 {dimension_numbers = #tpu.dot_dimension_numbers<[1], [0], [0], [1], [0, 0, 1, 1], [], []>} : vector<4x4xf32>, vector<4x256xf32>, vector<4x256xf32> -> vector<4x256xf32>
    %60 = arith.addf %50, %59 : vector<4x256xf32>
    %61 = vector.extract_strided_slice %13 {offsets = [0, 16], sizes = [4, 256], strides = [1, 1]} : vector<4x290xf32> to vector<4x256xf32>
    %c0_i32_30 = arith.constant 0 : i32
    %62 = arith.sitofp %c0_i32_30 : i32 to f32
    %63 = vector.shape_cast %32 : vector<1x256xi1> to vector<1x256xi1>
    %64 = vector.broadcast %63 : vector<1x256xi1> to vector<4x256xi1>
    %65 = vector.broadcast %62 : f32 to vector<4x256xf32>
    %66 = arith.select %64, %61, %65 : vector<4x256xi1>, vector<4x256xf32>
    %c1_31 = arith.constant 1 : index
    %c0_32 = arith.constant 0 : index
    %c0_33 = arith.constant 0 : index
    %c0_34 = arith.constant 0 : index
    %67 = vector.load %arg5[%c1_31, %c0_32, %c0_33, %c0_34] : memref<3x3x4x4xf32, #tpu.memory_space<vmem>>, vector<1x1x4x4xf32>
    %68 = vector.shape_cast %67 : vector<1x1x4x4xf32> to vector<4x4xf32>
    %cst_35 = arith.constant dense<0.000000e+00> : vector<4x256xf32>
    %69 = tpu.matmul %68, %66, %cst_35 {dimension_numbers = #tpu.dot_dimension_numbers<[1], [0], [0], [1], [0, 0, 1, 1], [], []>} : vector<4x4xf32>, vector<4x256xf32>, vector<4x256xf32> -> vector<4x256xf32>
    %70 = arith.addf %60, %69 : vector<4x256xf32>
    %71 = vector.extract_strided_slice %13 {offsets = [0, 17], sizes = [4, 256], strides = [1, 1]} : vector<4x290xf32> to vector<4x256xf32>
    %c1_36 = arith.constant 1 : index
    %c1_37 = arith.constant 1 : index
    %c0_38 = arith.constant 0 : index
    %c0_39 = arith.constant 0 : index
    %72 = vector.load %arg5[%c1_36, %c1_37, %c0_38, %c0_39] : memref<3x3x4x4xf32, #tpu.memory_space<vmem>>, vector<1x1x4x4xf32>
    %73 = vector.shape_cast %72 : vector<1x1x4x4xf32> to vector<4x4xf32>
    %cst_40 = arith.constant dense<0.000000e+00> : vector<4x256xf32>
    %74 = tpu.matmul %73, %71, %cst_40 {dimension_numbers = #tpu.dot_dimension_numbers<[1], [0], [0], [1], [0, 0, 1, 1], [], []>} : vector<4x4xf32>, vector<4x256xf32>, vector<4x256xf32> -> vector<4x256xf32>
    %75 = arith.addf %70, %74 : vector<4x256xf32>
    %76 = vector.extract_strided_slice %13 {offsets = [0, 18], sizes = [4, 256], strides = [1, 1]} : vector<4x290xf32> to vector<4x256xf32>
    %c0_i32_41 = arith.constant 0 : i32
    %77 = arith.sitofp %c0_i32_41 : i32 to f32
    %78 = vector.shape_cast %34 : vector<1x256xi1> to vector<1x256xi1>
    %79 = vector.broadcast %78 : vector<1x256xi1> to vector<4x256xi1>
    %80 = vector.broadcast %77 : f32 to vector<4x256xf32>
    %81 = arith.select %79, %76, %80 : vector<4x256xi1>, vector<4x256xf32>
    %c1_42 = arith.constant 1 : index
    %c2_43 = arith.constant 2 : index
    %c0_44 = arith.constant 0 : index
    %c0_45 = arith.constant 0 : index
    %82 = vector.load %arg5[%c1_42, %c2_43, %c0_44, %c0_45] : memref<3x3x4x4xf32, #tpu.memory_space<vmem>>, vector<1x1x4x4xf32>
    %83 = vector.shape_cast %82 : vector<1x1x4x4xf32> to vector<4x4xf32>
    %cst_46 = arith.constant dense<0.000000e+00> : vector<4x256xf32>
    %84 = tpu.matmul %83, %81, %cst_46 {dimension_numbers = #tpu.dot_dimension_numbers<[1], [0], [0], [1], [0, 0, 1, 1], [], []>} : vector<4x4xf32>, vector<4x256xf32>, vector<4x256xf32> -> vector<4x256xf32>
    %85 = arith.addf %75, %84 : vector<4x256xf32>
    %86 = vector.extract_strided_slice %13 {offsets = [0, 32], sizes = [4, 256], strides = [1, 1]} : vector<4x290xf32> to vector<4x256xf32>
    %c0_i32_47 = arith.constant 0 : i32
    %87 = arith.sitofp %c0_i32_47 : i32 to f32
    %88 = vector.shape_cast %32 : vector<1x256xi1> to vector<1x256xi1>
    %89 = vector.broadcast %88 : vector<1x256xi1> to vector<4x256xi1>
    %90 = vector.broadcast %87 : f32 to vector<4x256xf32>
    %91 = arith.select %89, %86, %90 : vector<4x256xi1>, vector<4x256xf32>
    %c2_48 = arith.constant 2 : index
    %c0_49 = arith.constant 0 : index
    %c0_50 = arith.constant 0 : index
    %c0_51 = arith.constant 0 : index
    %92 = vector.load %arg5[%c2_48, %c0_49, %c0_50, %c0_51] : memref<3x3x4x4xf32, #tpu.memory_space<vmem>>, vector<1x1x4x4xf32>
    %93 = vector.shape_cast %92 : vector<1x1x4x4xf32> to vector<4x4xf32>
    %cst_52 = arith.constant dense<0.000000e+00> : vector<4x256xf32>
    %94 = tpu.matmul %93, %91, %cst_52 {dimension_numbers = #tpu.dot_dimension_numbers<[1], [0], [0], [1], [0, 0, 1, 1], [], []>} : vector<4x4xf32>, vector<4x256xf32>, vector<4x256xf32> -> vector<4x256xf32>
    %95 = arith.addf %85, %94 : vector<4x256xf32>
    %96 = vector.extract_strided_slice %13 {offsets = [0, 33], sizes = [4, 256], strides = [1, 1]} : vector<4x290xf32> to vector<4x256xf32>
    %c2_53 = arith.constant 2 : index
    %c1_54 = arith.constant 1 : index
    %c0_55 = arith.constant 0 : index
    %c0_56 = arith.constant 0 : index
    %97 = vector.load %arg5[%c2_53, %c1_54, %c0_55, %c0_56] : memref<3x3x4x4xf32, #tpu.memory_space<vmem>>, vector<1x1x4x4xf32>
    %98 = vector.shape_cast %97 : vector<1x1x4x4xf32> to vector<4x4xf32>
    %cst_57 = arith.constant dense<0.000000e+00> : vector<4x256xf32>
    %99 = tpu.matmul %98, %96, %cst_57 {dimension_numbers = #tpu.dot_dimension_numbers<[1], [0], [0], [1], [0, 0, 1, 1], [], []>} : vector<4x4xf32>, vector<4x256xf32>, vector<4x256xf32> -> vector<4x256xf32>
    %100 = arith.addf %95, %99 : vector<4x256xf32>
    %101 = vector.extract_strided_slice %13 {offsets = [0, 34], sizes = [4, 256], strides = [1, 1]} : vector<4x290xf32> to vector<4x256xf32>
    %c0_i32_58 = arith.constant 0 : i32
    %102 = arith.sitofp %c0_i32_58 : i32 to f32
    %103 = vector.shape_cast %34 : vector<1x256xi1> to vector<1x256xi1>
    %104 = vector.broadcast %103 : vector<1x256xi1> to vector<4x256xi1>
    %105 = vector.broadcast %102 : f32 to vector<4x256xf32>
    %106 = arith.select %104, %101, %105 : vector<4x256xi1>, vector<4x256xf32>
    %c2_59 = arith.constant 2 : index
    %c2_60 = arith.constant 2 : index
    %c0_61 = arith.constant 0 : index
    %c0_62 = arith.constant 0 : index
    %107 = vector.load %arg5[%c2_59, %c2_60, %c0_61, %c0_62] : memref<3x3x4x4xf32, #tpu.memory_space<vmem>>, vector<1x1x4x4xf32>
    %108 = vector.shape_cast %107 : vector<1x1x4x4xf32> to vector<4x4xf32>
    %cst_63 = arith.constant dense<0.000000e+00> : vector<4x256xf32>
    %109 = tpu.matmul %108, %106, %cst_63 {dimension_numbers = #tpu.dot_dimension_numbers<[1], [0], [0], [1], [0, 0, 1, 1], [], []>} : vector<4x4xf32>, vector<4x256xf32>, vector<4x256xf32> -> vector<4x256xf32>
    %110 = arith.addf %100, %109 : vector<4x256xf32>
    %c0_64 = arith.constant 0 : index
    %c0_65 = arith.constant 0 : index
    %111 = vector.load %arg6[%c0_64, %c0_65] : memref<4x1xf32, #tpu.memory_space<vmem>>, vector<4x1xf32>
    %112 = vector.broadcast %111 : vector<4x1xf32> to vector<4x256xf32>
    %113 = arith.mulf %110, %112 : vector<4x256xf32>
    %c0_66 = arith.constant 0 : index
    %c0_67 = arith.constant 0 : index
    %114 = vector.load %arg7[%c0_66, %c0_67] : memref<4x1xf32, #tpu.memory_space<vmem>>, vector<4x1xf32>
    %115 = vector.broadcast %114 : vector<4x1xf32> to vector<4x256xf32>
    %116 = arith.addf %113, %115 : vector<4x256xf32>
    %cst_68 = arith.constant 0.000000e+00 : f32
    %117 = vector.broadcast %cst_68 : f32 to vector<4x256xf32>
    %118 = arith.maximumf %116, %117 : vector<4x256xf32>
    %c0_69 = arith.constant 0 : index
    %c0_70 = arith.constant 0 : index
    %119 = vector.load %arg8[%c0_69, %c0_70] : memref<16x4xf32, #tpu.memory_space<vmem>>, vector<16x4xf32>
    %cst_71 = arith.constant dense<0.000000e+00> : vector<16x256xf32>
    %120 = tpu.matmul %119, %118, %cst_71 {dimension_numbers = #tpu.dot_dimension_numbers<[1], [0], [0], [1], [0, 0, 1, 1], [], []>} : vector<16x4xf32>, vector<4x256xf32>, vector<16x256xf32> -> vector<16x256xf32>
    %c0_72 = arith.constant 0 : index
    %c0_73 = arith.constant 0 : index
    %121 = vector.load %arg9[%c0_72, %c0_73] : memref<16x1xf32, #tpu.memory_space<vmem>>, vector<16x1xf32>
    %122 = vector.broadcast %121 : vector<16x1xf32> to vector<16x256xf32>
    %123 = arith.mulf %120, %122 : vector<16x256xf32>
    %c0_74 = arith.constant 0 : index
    %c0_75 = arith.constant 0 : index
    %124 = vector.load %arg10[%c0_74, %c0_75] : memref<16x1xf32, #tpu.memory_space<vmem>>, vector<16x1xf32>
    %125 = vector.broadcast %124 : vector<16x1xf32> to vector<16x256xf32>
    %126 = arith.addf %123, %125 : vector<16x256xf32>
    %c0_76 = arith.constant 0 : index
    %c0_77 = arith.constant 0 : index
    %c0_78 = arith.constant 0 : index
    %127 = vector.load %arg1[%c0_76, %c0_77, %c0_78] : memref<1x16x256xf32, #tpu.memory_space<vmem>>, vector<1x16x256xf32>
    %128 = vector.shape_cast %127 : vector<1x16x256xf32> to vector<16x256xf32>
    %129 = arith.addf %126, %128 : vector<16x256xf32>
    %cst_79 = arith.constant 0.000000e+00 : f32
    %130 = vector.broadcast %cst_79 : f32 to vector<16x256xf32>
    %131 = arith.maximumf %129, %130 : vector<16x256xf32>
    %c0_80 = arith.constant 0 : index
    %c0_81 = arith.constant 0 : index
    %c0_82 = arith.constant 0 : index
    %132 = vector.load %arg11[%c0_80, %c0_81, %c0_82] : memref<1x16x256xf32, #tpu.memory_space<vmem>>, vector<1x16x256xf32>
    %133 = vector.shape_cast %132 : vector<1x16x256xf32> to vector<16x256xf32>
    %134 = vector.shape_cast %131 : vector<16x256xf32> to vector<1x16x256xf32>
    tpu.vector_store %arg11[%c0_80, %c0_81, %c0_82], %134 {strides = array<i32>} : memref<1x16x256xf32, #tpu.memory_space<vmem>>, vector<1x16x256xf32>,
    return
  }
  func.func @transform_0(%arg0: i32) -> (i32, i32, i32) {
    %c0_i32 = arith.constant 0 : i32
    %c0_i32_0 = arith.constant 0 : i32
    %c0_i32_1 = arith.constant 0 : i32
    return %arg0, %c0_i32, %c0_i32_0 : i32, i32, i32
  }
  func.func @transform_1(%arg0: i32) -> (i32, i32) {
    %c0_i32 = arith.constant 0 : i32
    %c0_i32_0 = arith.constant 0 : i32
    %c0_i32_1 = arith.constant 0 : i32
    return %c0_i32, %c0_i32_0 : i32, i32
  }
  func.func @transform_2(%arg0: i32) -> (i32, i32) {
    %c0_i32 = arith.constant 0 : i32
    %c0_i32_0 = arith.constant 0 : i32
    %c0_i32_1 = arith.constant 0 : i32
    return %c0_i32, %c0_i32_0 : i32, i32
  }
  func.func @transform_3(%arg0: i32) -> (i32, i32) {
    %c0_i32 = arith.constant 0 : i32
    %c0_i32_0 = arith.constant 0 : i32
    %c0_i32_1 = arith.constant 0 : i32
    return %c0_i32, %c0_i32_0 : i32, i32
  }
  func.func @transform_4(%arg0: i32) -> (i32, i32, i32, i32) {
    %c0_i32 = arith.constant 0 : i32
    %c0_i32_0 = arith.constant 0 : i32
    %c0_i32_1 = arith.constant 0 : i32
    %c0_i32_2 = arith.constant 0 : i32
    %c0_i32_3 = arith.constant 0 : i32
    return %c0_i32, %c0_i32_0, %c0_i32_1, %c0_i32_2 : i32, i32, i32, i32
  }
  func.func @transform_5(%arg0: i32) -> (i32, i32) {
    %c0_i32 = arith.constant 0 : i32
    %c0_i32_0 = arith.constant 0 : i32
    %c0_i32_1 = arith.constant 0 : i32
    return %c0_i32, %c0_i32_0 : i32, i32
  }
  func.func @transform_6(%arg0: i32) -> (i32, i32) {
    %c0_i32 = arith.constant 0 : i32
    %c0_i32_0 = arith.constant 0 : i32
    %c0_i32_1 = arith.constant 0 : i32
    return %c0_i32, %c0_i32_0 : i32, i32
  }
  func.func @transform_7(%arg0: i32) -> (i32, i32) {
    %c0_i32 = arith.constant 0 : i32
    %c0_i32_0 = arith.constant 0 : i32
    %c0_i32_1 = arith.constant 0 : i32
    return %c0_i32, %c0_i32_0 : i32, i32
  }
  func.func @transform_8(%arg0: i32) -> (i32, i32) {
    %c0_i32 = arith.constant 0 : i32
    %c0_i32_0 = arith.constant 0 : i32
    %c0_i32_1 = arith.constant 0 : i32
    return %c0_i32, %c0_i32_0 : i32, i32
  }
  func.func @transform_9(%arg0: i32) -> (i32, i32) {
    %c0_i32 = arith.constant 0 : i32
    %c0_i32_0 = arith.constant 0 : i32
    %c0_i32_1 = arith.constant 0 : i32
    return %c0_i32, %c0_i32_0 : i32, i32
  }
  func.func @transform_10(%arg0: i32) -> (i32, i32, i32) {
    %c0_i32 = arith.constant 0 : i32
    %c0_i32_0 = arith.constant 0 : i32
    %c0_i32_1 = arith.constant 0 : i32
    return %arg0, %c0_i32, %c0_i32_0 : i32, i32, i32
  }
}

</mosaic_0001>

<bundles_post_ra>
// kernel: bottleneck_forward.1
= control target key start
LH: loop header
LB: loop body
LE: loop exit
PB: predicated region body
PF: predicated region fallthrough
CT: control target
= control target key end

     0   :  { %s1729_s13 = smov 0   ;;  %s1936_s0 = inlined_call_operand.vmem [shape: f32[2,16,256], index: 0, kind: input, shape index: {}]   ;;  %s1937_s1 = inlined_call_operand.vmem [shape: f32[4,16], index: 1, kind: input, shape index: {}]   ;;  %s1938_s2 = inlined_call_operand.vmem [shape: f32[4,1], index: 2, kind: input, shape index: {}]   ;;  %s1939_s3 = inlined_call_operand.vmem [shape: f32[4,1], index: 3, kind: input, shape index: {}]   ;;  %s1940_s4 = inlined_call_operand.vmem [shape: f32[3,3,4,4], index: 4, kind: input, shape index: {}]   ;;  %s1941_s5 = inlined_call_operand.vmem [shape: f32[4,1], index: 5, kind: input, shape index: {}]   ;;  %s1942_s6 = inlined_call_operand.vmem [shape: f32[4,1], index: 6, kind: input, shape index: {}]   ;;  %s1943_s7 = inlined_call_operand.vmem [shape: f32[16,4], index: 7, kind: input, shape index: {}]   ;;  %s1944_s8 = inlined_call_operand.vmem [shape: f32[16,1], index: 8, kind: input, shape index: {}]   ;;  %s1945_s9 = inlined_call_operand.vmem [shape: f32[16,1], index: 9, kind: input, shape index: {}]   ;;  %s1946_s10 = inlined_call_operand.vmem [shape: f32[2,16,256], index: 10, kind: output, shape index: {}]  }
   0x1 LB: > { %s1561_s14 = sadd.s32 4294967295, %s1661_s13   ;;  %p1565_p0 = scmp.ge.s32.totalorder %s1661_s13, 1  ;;  %s1661_s13 = sphi %s1729_s13, %s20_s13  }
   0x2   : > { %p312_p1 = scmp.lt.s32.totalorder %s1661_s13, 3 }
   0x4   : > { %p313_p2 = pnand %p1565_p0, %p312_p1 }
   0x5   : > { %p350_p3 = scmp.lt.s32.totalorder (!%p313_p2), %s1561_s14, 1  ;;  %v1663_v0 = vmov (!%p313_p2), 0.0   ;;  %v1664_v1 = vmov (!%p313_p2), 0   ;;  %v440_v2 = vld [vmem:[%s1938_s2] sm:$0xf] (!%p313_p2)  ;;  %vm365_vm0 = vcmask (!%p313_p2), 130048   ;;  %v471_v32 = vlaneseq (!%p313_p2) }
   0x6   : > { %316 = sbr.rel (%p313_p2) target bundleno = 972 (0x3cc), region = 60  ;;  %433 = vmatprep.mubr.f32.mxu0 (!%p313_p2), %v1663_v0  ;;  %1653 = vset.pattern.permute.xlu0 (!%p313_p2), %v1664_v1  ;;  %v448_v3 = vld [vmem:[%s1939_s3] sm:$0xf] (!%p313_p2)  ;;  %s1665_s25 = smov (!%p313_p2), 17   ;;  %vm464_vm1 = vcmask (!%p313_p2), 138240   ;;  %v1463_v30 = vld [vmem:[%s1944_s8 + $0x8] sm:$0xff] (!%p313_p2) }
   0x7   : > { %443 = vperm.xlu0 (!%p313_p2), %1653, %v440_v2   ;;  %871 = vmatprep.mubr.f32.mxu1 (!%p313_p2), %v1663_v0  ;;  %v360_v10 = vld [vmem:[%s1937_s1] sm:$0xf] (!%p313_p2)  ;;  %s1666_s26 = smov (!%p313_p2), 112   ;;  %s1667_s27 = smov (!%p313_p2), 111   ;;  %v1479_v31 = vld [vmem:[%s1945_s9 + $0x8] sm:$0xff] (!%p313_p2)  ;;  %v472_v33 = vand.u32 (!%p313_p2), 127, %v471_v32 }
   0x8   : > { %1654 = vset.pattern.permute.xlu1 (!%p313_p2), %v1664_v1  ;;  %s1668_s28 = smov (!%p313_p2), 96   ;;  %s1669_s29 = smov (!%p313_p2), 110   ;;  %v1353_v26 = vld [vmem:[%s1941_s5] sm:$0xf] (!%p313_p2)  ;;  %vm789_vm2 = vcmask (!%p313_p2), 916480   ;;  %vm526_vm3 = vcmask (!%p313_p2), 1043456  }
   0x9   : > { %s1670_s30 = smov (!%p313_p2), 95   ;;  %s1671_s11 = smov (!%p313_p2), 127   ;;  %v1462_v27 = vld [vmem:[%s1944_s8] sm:$0xff] (!%p313_p2)  ;;  %v473_v34 = vadd.s32 (!%p313_p2), 128, %v472_v33  ;;  %v478_v40 = vand.u32 (!%p313_p2), 15, %v472_v33  ;;  %vm522_vm6 = vcmask (!%p313_p2), 31744  }
   0xa   : > { %s1672_s12 = smov (!%p313_p2), 126   ;;  %s1673_s15 = smov (!%p313_p2), 94   ;;  %v1478_v28 = vld [vmem:[%s1945_s9] sm:$0xff] (!%p313_p2)  ;;  %v1582_v46 = vld [vmem:[%s1940_s4 + $0xc] sm:$0xf] (!%p313_p2)  ;;  %vm888_vm7 = vcmask (!%p313_p2), 908288  }
   0xb   : > { %451 = vperm.xlu0 (!%p313_p2), %1653, %v448_v3   ;;  %v1361_v29 = vld [vmem:[%s1942_s6] sm:$0xf] (!%p313_p2)  ;;  %v485_v35 = vand.u32 (!%p313_p2), 15, %v473_v34  ;;  %vm1814_vm5 = vcmp.ge.s32.totalorder (!%p313_p2), %v478_v40, 1  ;;  %v1586_v54 = vld [vmem:[%s1940_s4 + $0x10] sm:$0xf] (!%p313_p2) }
   0xc   : > { %vm977_vm8 = vcmask (!%p313_p2), 900096   ;;  %vm1831_vm9 = vcmp.le.s32.totalorder (!%p313_p2), %v478_v40, 14  ;;  %v1590_v2 = vld [vmem:[%s1940_s4 + $0x14] sm:$0xf] (!%p313_p2)  ;;  %vm1074_vm11 = vcmask (!%p313_p2), 785408   ;;  %vm519_vm12 = vcmask (!%p313_p2), 1039360  }
   0xd   : > { %s1956_s14 = smov (!%p350_p3, %s1561_s14), 1  ;;  %vm1807_vm4 = vcmp.ge.s32.totalorder %v485_v35, 1  ;;  %vm1835_vm10 = vcmp.le.s32.totalorder %v485_v35, 14  ;;  %vm1173_vm13 = vcmask 777216   ;;  %vm692_vm14 = vcmask 1031168  }
   0xe   : > { %s1612_s19 = sshll.u32 %s1956_s14, 5  ;;  %vm1262_vm15 = vcmask 769024   ;;  %v1602_v40 = vld [vmem:[%s1940_s4 + $0x20] sm:$0xf] }
   0xf   : > { %s354_s22 = scalar_lea.vmem %s1936_s0, %s1612_s19  ;;  %s359_s18 = scalar_lea.vmem %s1946_s10, %s1612_s19 }
  0x10   : > { %v1753_v4 = vld [vmem:[%s354_s22 + $0x8] sm:$0xff]  ;;  %v1755_v5 = vld [vmem:[%s354_s22 + $0x18] sm:$0xff]  ;;  %v1757_v6 = vld [vmem:[%s354_s22] sm:$0xff] }
  0x11   : > { %v1614_v7 = vpack.c.bf16 %v1755_v5, %v1753_v4  ;;  %v1761_v8 = vld [vmem:[%s354_s22 + $0x10] sm:$0xff] }
  0x12   : > { %v1616_v9 = vpack.c.bf16 %v1761_v8, %v1757_v6 }
  0x13   : > { %1615 = vmatprep.subr.bf16.mxu0 %v1614_v7 }
  0x14   : > { %1617 = vmatpush1.bf16.msra.mxu0 %v1616_v9 }
  0x17   : > { %1570 = vmatmul.mubr.msk.f32.vlgmr.msra.gmra.mrb[0].mxu0 %vm365_vm0, %v360_v10 }
  0x18   : > { %595 = vmatprep.mubr.f32.mxu0 %v1663_v0 }
  0x86   : > { %v444_v11 = vpop.permute.xlu0 %443 }
  0x8a   : > { %v452_v15 = vpop.permute.xlu0 %451 }
  0xea   : > { %v435_v12 = vpop.f32.mrb[0].mxu0 }
  0xeb   : > { %v446_v13 = vmul.f32 %v444_v11, %v435_v12  ;;  %v437_v14 = vpop.f32.mrb[1].mxu0 }
  0xec   : > { %v447_v16 = vmul.f32 %v444_v11, %v437_v14 }
  0xed   : > { %v454_v17 = vadd.f32 %v452_v15, %v446_v13 }
  0xee   : > { %v455_v18 = vadd.f32 %v452_v15, %v447_v16 }
  0xef   : > { %v456_v19 = vmax.f32 %v454_v17, 0.0  ;;  %v1571_v17 = vld [vmem:[%s1940_s4 + $0x4] sm:$0xf] }
  0xf0   : > { %v457_v20 = vmax.f32 %v455_v18, 0.0  ;;  %v1594_v18 = vld [vmem:[%s1940_s4 + $0x18] sm:$0xf] }
  0xf1   : > { %460 = vrot.lane.b32.xlu1 %v456_v19, %s1665_s25 }
  0xf5   : > { %462 = vrot.lane.b32.xlu1 %v457_v20, %s1665_s25 }
 0x163   : > { %v461_v21 = vpop.permute.xlu1 %460 }
 0x164   : > { %v1772_v25 = vsel %vm464_vm1, 0.0, %v461_v21 }
 0x167   : > { %v463_v22 = vpop.permute.xlu1 %462 }
 0x168   : > { %v1769_v23 = vsel %vm464_vm1, %v461_v21, %v463_v22  ;;  %v470_v24 = vsel %vm464_vm1, %v463_v22, 0.0 }
 0x169   : > { %787 = vrot.lane.b32.xlu1 %v470_v24, %s1666_s26  ;;  %785 = vrot.lane.b32.xlu0 %v1769_v23, %s1666_s26  ;;  %v507_v21 = vsel %vm1807_vm4, %v1769_v23, 0.0 }
 0x16d   : > { %882 = vrot.lane.b32.xlu1 %v1772_v25, %s1667_s27  ;;  %783 = vrot.lane.b32.xlu0 %v1772_v25, %s1666_s26 }
 0x171   : > { %1068 = vrot.lane.b32.xlu1 %v1772_v25, %s1668_s28  ;;  %971 = vrot.lane.b32.xlu0 %v1772_v25, %s1669_s29 }
 0x175   : > { %884 = vrot.lane.b32.xlu1 %v1769_v23, %s1667_s27  ;;  %886 = vrot.lane.b32.xlu0 %v470_v24, %s1667_s27 }
 0x179   : > { %975 = vrot.lane.b32.xlu1 %v470_v24, %s1669_s29  ;;  %973 = vrot.lane.b32.xlu0 %v1769_v23, %s1669_s29 }
 0x17d   : > { %1167 = vrot.lane.b32.xlu1 %v1772_v25, %s1670_s30  ;;  %513 = vrot.lane.b32.xlu0 %v1772_v25, %s1671_s11 }
 0x181   : > { %1070 = vrot.lane.b32.xlu1 %v1769_v23, %s1668_s28  ;;  %1072 = vrot.lane.b32.xlu0 %v470_v24, %s1668_s28 }
 0x185   : > { %515 = vrot.lane.b32.xlu1 %v1769_v23, %s1671_s11  ;;  %517 = vrot.lane.b32.xlu0 %v470_v24, %s1671_s11 }
 0x189   : > { %1169 = vrot.lane.b32.xlu1 %v1769_v23, %s1670_s30  ;;  %1171 = vrot.lane.b32.xlu0 %v470_v24, %s1670_s30 }
 0x18d   : > { %690 = vrot.lane.b32.xlu1 %v470_v24, %s1672_s12  ;;  %688 = vrot.lane.b32.xlu0 %v1769_v23, %s1672_s12 }
 0x191   : > { %1260 = vrot.lane.b32.xlu1 %v470_v24, %s1673_s15  ;;  %1258 = vrot.lane.b32.xlu0 %v1769_v23, %s1673_s15 }
 0x195   : > { %1256 = vrot.lane.b32.xlu1 %v1772_v25, %s1673_s15  ;;  %686 = vrot.lane.b32.xlu0 %v1772_v25, %s1672_s12 }
 0x199   : > { %1356 = vperm.xlu0 %1653, %v1353_v26   ;;  %1364 = vperm.xlu1 %1654, %v1361_v29   ;;  %v506_v26 = vsel %vm1814_vm5, %v1772_v25, 0.0  ;;  %v1598_v29 = vld [vmem:[%s1940_s4 + $0x1c] sm:$0xf]  ;;  %v508_v25 = vld [vmem:[%s1940_s4] sm:$0xf] }
 0x19d   : > { %1466 = vperm.xlu0 %1653, %v1462_v27   ;;  %1471 = vperm.xlu1 %1654, %v1463_v30  }
 0x1a1   : > { %1482 = vperm.xlu0 %1653, %v1478_v28   ;;  %1487 = vperm.xlu1 %1654, %v1479_v31  }
 0x1db   : > { %v788_v36 = vpop.permute.xlu1 %787  ;;  %v786_v37 = vpop.permute.xlu0 %785 }
 0x1dc   : > { %v791_v39 = vsel %vm789_vm2, %v786_v37, %v788_v36 }
 0x1dd   : > { %v795_v41 = vsel %vm1807_vm4, %v791_v39, 0.0  ;;  %v1578_v39 = vld [vmem:[%s1940_s4 + $0x8] sm:$0xf] }
 0x1de   : > { %1583 = vmatprep.subr.msk.mxu1 %vm526_vm3, %v795_v41 }
 0x1df   : > { %v883_v42 = vpop.permute.xlu1 %882  ;;  %v784_v43 = vpop.permute.xlu0 %783 }
 0x1e0   : > { %v790_v44 = vsel %vm789_vm2, %v784_v43, %v786_v37 }
 0x1e1   : > { %v794_v47 = vsel %vm1814_vm5, %v790_v44, 0.0 }
 0x1e2   : > { %1584 = vmatpush1.msk.msra.mxu1 %vm526_vm3, %v794_v47 }
 0x1e3   : > { %v1069_v48 = vpop.permute.xlu1 %1068  ;;  %1585 = vmatmul.mubr.msk.f32.vlgmr.msra.gmra.mrb[0].mxu1 %vm522_vm6, %v1582_v46  ;;  %v972_v49 = vpop.permute.xlu0 %971 }
 0x1e4   : > { %962 = vmatprep.mubr.f32.mxu1 %v1663_v0 }
 0x1e7   : > { %v885_v50 = vpop.permute.xlu1 %884  ;;  %v887_v51 = vpop.permute.xlu0 %886 }
 0x1e8   : > { %v889_v52 = vsel %vm888_vm7, %v883_v42, %v885_v50  ;;  %v890_v53 = vsel %vm888_vm7, %v885_v50, %v887_v51 }
 0x1e9   : > { %1587 = vmatprep.subr.msk.mxu1 %vm526_vm3, %v890_v53 }
 0x1ea   : > { %1588 = vmatpush1.msk.msra.mxu1 %vm526_vm3, %v889_v52 }
 0x1eb   : > { %v976_v57 = vpop.permute.xlu1 %975  ;;  %1589 = vmatmul.mubr.msk.f32.vlgmr.msra.gmra.mrb[0].mxu1 %vm522_vm6, %v1586_v54  ;;  %v974_v58 = vpop.permute.xlu0 %973 }
 0x1ec   : > { %v978_v59 = vsel %vm977_vm8, %v972_v49, %v974_v58  ;;  %v979_v60 = vsel %vm977_vm8, %v974_v58, %v976_v57  ;;  %1059 = vmatprep.mubr.f32.mxu1 %v1663_v0  ;;  %v1371_v57 = vld [vmem:[%s1943_s7] sm:$0xff]  ;;  %v1372_v58 = vld [vmem:[%s1943_s7 + $0x8] sm:$0xff] }
 0x1ed   : > { %v982_v61 = vsel %vm1831_vm9, %v978_v59, 0.0  ;;  %v983_v62 = vsel %vm1835_vm10, %v979_v60, 0.0 }
 0x1ee   : > { %1591 = vmatprep.subr.msk.mxu1 %vm526_vm3, %v983_v62 }
 0x1ef   : > { %v1168_v63 = vpop.permute.xlu1 %1167  ;;  %1592 = vmatpush1.msk.msra.mxu1 %vm526_vm3, %v982_v61  ;;  %v514_v1 = vpop.permute.xlu0 %513 }
 0x1f3   : > { %v1071_v3 = vpop.permute.xlu1 %1070  ;;  %1593 = vmatmul.mubr.msk.f32.vlgmr.msra.gmra.mrb[0].mxu1 %vm522_vm6, %v1590_v2  ;;  %v1073_v7 = vpop.permute.xlu0 %1072 }
 0x1f4   : > { %v1075_v9 = vsel %vm1074_vm11, %v1069_v48, %v1071_v3  ;;  %v1076_v10 = vsel %vm1074_vm11, %v1071_v3, %v1073_v7  ;;  %1156 = vmatprep.mubr.f32.mxu1 %v1663_v0 }
 0x1f5   : > { %v1079_v11 = vsel %vm1814_vm5, %v1075_v9, 0.0  ;;  %v1080_v12 = vsel %vm1807_vm4, %v1076_v10, 0.0 }
 0x1f6   : > { %1595 = vmatprep.subr.msk.mxu1 %vm526_vm3, %v1080_v12 }
 0x1f7   : > { %v516_v13 = vpop.permute.xlu1 %515  ;;  %1596 = vmatpush1.msk.msra.mxu1 %vm526_vm3, %v1079_v11  ;;  %v518_v14 = vpop.permute.xlu0 %517 }
 0x1f8   : > { %v520_v15 = vsel %vm519_vm12, %v514_v1, %v516_v13  ;;  %v521_v16 = vsel %vm519_vm12, %v516_v13, %v518_v14 }
 0x1f9   : > { %1572 = vmatprep.subr.msk.mxu0 %vm526_vm3, %v521_v16 }
 0x1fa   : > { %1573 = vmatpush1.msk.msra.mxu0 %vm526_vm3, %v520_v15 }
 0x1fb   : > { %v1170_v19 = vpop.permute.xlu1 %1169  ;;  %1574 = vmatmul.mubr.msk.f32.vlgmr.msra.gmra.mrb[2].mxu0 %vm522_vm6, %v1571_v17  ;;  %1597 = vmatmul.mubr.msk.f32.vlgmr.msra.gmra.mrb[0].mxu1 %vm522_vm6, %v1594_v18  ;;  %v1172_v20 = vpop.permute.xlu0 %1171 }
 0x1fc   : > { %v1174_v22 = vsel %vm1173_vm13, %v1168_v63, %v1170_v19  ;;  %v1175_v24 = vsel %vm1173_vm13, %v1170_v19, %v1172_v20  ;;  %1575 = vmatprep.subr.msk.mxu0 %vm526_vm3, %v507_v21  ;;  %675 = vmatprep.mubr.f32.mxu0 %v1663_v0 }
 0x1fd   : > { %1576 = vmatpush1.msk.msra.mxu0 %vm526_vm3, %v506_v26  ;;  %1599 = vmatprep.subr.msk.mxu1 %vm526_vm3, %v1175_v24 }
 0x1fe   : > { %1600 = vmatpush1.msk.msra.mxu1 %vm526_vm3, %v1174_v22  ;;  %1247 = vmatprep.mubr.f32.mxu1 %v1663_v0 }
 0x1ff   : > { %v691_v23 = vpop.permute.xlu1 %690  ;;  %v689_v27 = vpop.permute.xlu0 %688 }
 0x200   : > { %v694_v28 = vsel %vm692_vm14, %v689_v27, %v691_v23 }
 0x201   : > { %v698_v30 = vsel %vm1835_vm10, %v694_v28, 0.0 }
 0x202   : > { %1579 = vmatprep.subr.msk.mxu0 %vm526_vm3, %v698_v30 }
 0x203   : > { %v1261_v31 = vpop.permute.xlu1 %1260  ;;  %1601 = vmatmul.mubr.msk.f32.vlgmr.msra.gmra.mrb[0].mxu1 %vm522_vm6, %v1598_v29  ;;  %v1259_v32 = vpop.permute.xlu0 %1258  ;;  %1577 = vmatmul.mubr.msk.f32.vlgmr.msra.gmra.mrb[2].mxu0 %vm522_vm6, %v508_v25 }
 0x204   : > { %v1264_v33 = vsel %vm1262_vm15, %v1259_v32, %v1261_v31  ;;  %774 = vmatprep.mubr.f32.mxu0 %v1663_v0  ;;  %1344 = vmatprep.mubr.f32.mxu1 %v1663_v0 }
 0x205   : > { %v1268_v34 = vsel %vm1835_vm10, %v1264_v33, 0.0 }
 0x206   : > { %1603 = vmatprep.subr.msk.mxu1 %vm526_vm3, %v1268_v34 }
 0x207   : > { %v1257_v35 = vpop.permute.xlu1 %1256  ;;  %v687_v36 = vpop.permute.xlu0 %686 }
 0x208   : > { %v1263_v37 = vsel %vm1262_vm15, %v1257_v35, %v1259_v32  ;;  %v693_v38 = vsel %vm692_vm14, %v687_v36, %v689_v27 }
 0x209   : > { %v1267_v41 = vsel %vm1831_vm9, %v1263_v37, 0.0  ;;  %v697_v42 = vsel %vm1831_vm9, %v693_v38, 0.0 }
 0x20a   : > { %1580 = vmatpush1.msk.msra.mxu0 %vm526_vm3, %v697_v42  ;;  %1604 = vmatpush1.msk.msra.mxu1 %vm526_vm3, %v1267_v41 }
 0x20b   : > { %1581 = vmatmul.mubr.msk.f32.vlgmr.msra.gmra.mrb[2].mxu0 %vm522_vm6, %v1578_v39  ;;  %1605 = vmatmul.mubr.msk.f32.vlgmr.msra.gmra.mrb[0].mxu1 %vm522_vm6, %v1602_v40 }
 0x20c   : > { %1449 = vmatprep.mubr.f32.mxu0 %v1663_v0 }
 0x218   : > { %v1357_v48 = vpop.permute.xlu0 %1356  ;;  %v1365_v51 = vpop.permute.xlu1 %1364 }
 0x21c   : > { %v1467_v59 = vpop.permute.xlu0 %1466  ;;  %v1472_v60 = vpop.permute.xlu1 %1471 }
 0x220   : > { %v1483_v1 = vpop.permute.xlu0 %1482  ;;  %v1488_v12 = vpop.permute.xlu1 %1487 }
 0x2de   : > { %v776_v43 = vpop.f32.mrb[2].mxu0  ;;  %v1346_v44 = vpop.f32.mrb[0].mxu1 }
 0x2df   : > { %v1618_v45 = vadd.f32 %v1346_v44, %v776_v43  ;;  %v778_v46 = vpop.f32.mrb[3].mxu0  ;;  %v1348_v47 = vpop.f32.mrb[1].mxu1 }
 0x2e0   : > { %v1619_v49 = vadd.f32 %v1348_v47, %v778_v46 }
 0x2e1   : > { %v1359_v50 = vmul.f32 %v1618_v45, %v1357_v48 }
 0x2e2   : > { %v1360_v52 = vmul.f32 %v1619_v49, %v1357_v48 }
 0x2e3   : > { %v1367_v53 = vadd.f32 %v1365_v51, %v1359_v50 }
 0x2e4   : > { %v1368_v54 = vadd.f32 %v1365_v51, %v1360_v52 }
 0x2e5   : > { %v1369_v56 = vmax.f32 %v1367_v53, 0.0 }
 0x2e6   : > { %v1370_v55 = vmax.f32 %v1368_v54, 0.0 }
 0x2e8   : > { %1606 = vmatprep.subr.msk.mxu0 %vm526_vm3, %v1370_v55 }
 0x2e9   : > { %1607 = vmatpush1.msk.msra.mxu0 %vm526_vm3, %v1369_v56 }
 0x2ea   : > { %1608 = vmatmul.mubr.msk.f32.vlgmr.msra.gmra.mrb[4].mxu0 %vm522_vm6, %v1371_v57 }
 0x2eb   : > { %1455 = vmatprep.mubr.f32.mxu0 %v1663_v0 }
 0x2ee   : > { %1609 = vmatmul.mubr.msk.f32.gmra.mrb[6].mxu0 %vm522_vm6, %v1372_v58 }
 0x3bd   : > { %v1451_v61 = vpop.f32.mrb[4].mxu0 }
 0x3be   : > { %v1474_v62 = vmul.f32 %v1467_v59, %v1451_v61  ;;  %v1453_v63 = vpop.f32.mrb[5].mxu0 }
 0x3bf   : > { %v1475_v2 = vmul.f32 %v1467_v59, %v1453_v63 }
 0x3c0   : > { %v1490_v3 = vadd.f32 %v1483_v1, %v1474_v62 }
 0x3c1   : > { %v1491_v7 = vadd.f32 %v1483_v1, %v1475_v2  ;;  %v1457_v9 = vpop.f32.mrb[6].mxu0 }
 0x3c2   : > { %v1494_v10 = vadd.f32 %v1490_v3, %v1757_v6  ;;  %v1476_v0 = vmul.f32 %v1472_v60, %v1457_v9  ;;  %v1459_v11 = vpop.f32.mrb[7].mxu0 }
 0x3c3   : > { %v1495_v13 = vadd.f32 %v1491_v7, %v1753_v4  ;;  %v1477_v14 = vmul.f32 %v1472_v60, %v1459_v11 }
 0x3c4   : > { %v1498_v15 = vmax.f32 %v1494_v10, 0.0  ;;  %v1492_v16 = vadd.f32 %v1488_v12, %v1476_v0 }
 0x3c5   : > { %v1499_v17 = vmax.f32 %v1495_v13, 0.0  ;;  %v1493_v18 = vadd.f32 %v1488_v12, %v1477_v14 }
 0x3c6   : > { %1502 = vst [vmem:[%s359_s18] sm:$0xff] %v1498_v15  ;;  %v1496_v19 = vadd.f32 %v1492_v16, %v1761_v8 }
 0x3c7   : > { %1503 = vst [vmem:[%s359_s18 + $0x8] sm:$0xff] %v1499_v17  ;;  %v1497_v6 = vadd.f32 %v1493_v18, %v1755_v5 }
 0x3c8   : > { %v1500_v20 = vmax.f32 %v1496_v19, 0.0 }
 0x3c9   : > { %v1501_v21 = vmax.f32 %v1497_v6, 0.0 }
 0x3ca   : > { %1504 = vst [vmem:[%s359_s18 + $0x10] sm:$0xff] %v1500_v20 }
 0x3cb   : > { %1505 = vst [vmem:[%s359_s18 + $0x18] sm:$0xff] %v1501_v21 }
 0x3cc PF: > { %s20_s13 = sadd.s32 1, %s1661_s13  }
 0x3cd   : > { %p17_p4 = scmp.ge.s32.totalorder %s20_s13, 4  }
 0x3cf   :  { %19 = sbr.rel (!%p17_p4) target bundleno = 1 (0x1), region = 98 }

</bundles_post_ra>
